<compile_context>
chip_gen: v5e
topology: v5e:2x2
jax: 0.10.0
libtpu: 0.0.40
codegen_flags: <defaults>
</compile_context>

<pallas_src>
import functools

import jax
import jax.numpy as jnp
import numpy as np
from jax.experimental import pallas as pl
from jax.experimental.pallas import tpu as pltpu


def _round_up(x, m):
    return (x + m - 1) // m * m


def rnn_kernel(x_ref, wih_ref, whh_ref, b_ref, wout_ref, bout_ref,
               hn_ref, ls_ref, *, seq_len):
    """Single-invocation RNN forward.

    x_ref    : (S*Bp, I)  flattened, batch padded to Bp (multiple of 8)
    wih_ref  : (I, H)     W_ih^T
    whh_ref  : (H, H)     W_hh^T
    b_ref    : (1, H)     b_ih + b_hh
    wout_ref : (H, P)     W_out^T
    bout_ref : (1, P)     b_out
    hn_ref   : (1, Bp, H) final hidden state
    ls_ref   : (Bp, P)    log_softmax of the projection (lane-dense layout)
    """
    bp = hn_ref.shape[1]
    hdim = whh_ref.shape[0]

    # (1) Hoisted input projection: ONE (S*Bp, I) @ (I, H) matmul + bias,
    #     instead of S tiny matmuls sitting on the serial critical path.
    xw = (jnp.dot(x_ref[...], wih_ref[...], preferred_element_type=jnp.float32)
          + b_ref[...])                                        # (S*Bp, H)

    # (2) Sequential recurrence, fully unrolled (seq_len is static & small).
    #     Per-step critical path: one MXU matmul + add + tanh.
    h = jnp.zeros((bp, hdim), jnp.float32)
    for t in range(seq_len):
        pre = xw[t * bp:(t + 1) * bp, :] + jnp.dot(
            h, whh_ref[...], preferred_element_type=jnp.float32)
        h = jnp.tanh(pre)

    # Final hidden state: (1, Bp, H)
    hn_ref[0] = h.astype(hn_ref.dtype)

    # (3) Fused projection + log_softmax, emitted lane-dense as (Bp, P).
    #     The wrapper transposes to (P, B) to match the PyTorch output shape.
    proj = (jnp.dot(h, wout_ref[...], preferred_element_type=jnp.float32)
            + bout_ref[...])                                   # (Bp, P)
    m = jnp.max(proj, axis=-1, keepdims=True)
    shifted = proj - m
    lse = jnp.log(jnp.sum(jnp.exp(shifted), axis=-1, keepdims=True))
    ls_ref[...] = (shifted - lse).astype(ls_ref.dtype)


def custom_rnn_forward(x, w_ih, w_hh, b_ih, b_hh, w_out, b_out):
    """x: (S, B, I). Weights in PyTorch convention:
       w_ih (H, I), w_hh (H, H), b_ih (H,), b_hh (H,), w_out (P, H), b_out (P,)."""
    S, B, I = x.shape
    H = w_hh.shape[0]
    P = w_out.shape[0]

    # Pad batch to a sublane multiple (8). Rows are independent through the
    # whole recurrence and the row-wise log_softmax, so padded rows are just
    # discarded at the end.
    Bp = _round_up(B, 8)
    x_p = jnp.zeros((S, Bp, I), jnp.float32).at[:, :B, :].set(
        x.astype(jnp.float32))
    x2d = x_p.reshape(S * Bp, I)                               # (S*Bp, I)

    wih_t = jnp.transpose(w_ih).astype(jnp.float32)            # (I, H)
    whh_t = jnp.transpose(w_hh).astype(jnp.float32)            # (H, H)
    b = (b_ih + b_hh).reshape(1, H).astype(jnp.float32)        # (1, H)
    wout_t = jnp.transpose(w_out).astype(jnp.float32)          # (H, P)
    bout = b_out.reshape(1, P).astype(jnp.float32)             # (1, P)

    vmem_specs = [pl.BlockSpec(memory_space=pltpu.MemorySpace.VMEM)
                  for _ in range(6)]

    hn_p, ls_p = pl.pallas_call(
        functools.partial(rnn_kernel, seq_len=S),
        out_shape=(
            jax.ShapeDtypeStruct((1, Bp, H), jnp.float32),
            jax.ShapeDtypeStruct((Bp, P), jnp.float32),
        ),
        in_specs=vmem_specs,
        out_specs=(
            pl.BlockSpec(memory_space=pltpu.MemorySpace.VMEM),
            pl.BlockSpec(memory_space=pltpu.MemorySpace.VMEM),
        ),
    )(x2d, wih_t, whh_t, b, wout_t, bout)

    h_n = hn_p[:, :B, :]              # (1, B, H)
    log_soft = ls_p[:B, :].T          # (P, B), log_softmax over the P axis
    return h_n, log_soft


def reference_forward(x, w_ih, w_hh, b_ih, b_hh, w_out, b_out):
    S, B, I = x.shape
    H = w_hh.shape[0]
    h = jnp.zeros((B, H), jnp.float32)
    for t in range(S):
        h = jnp.tanh(x[t] @ w_ih.T + b_ih + h @ w_hh.T + b_hh)
    proj = (h @ w_out.T + b_out).T                             # (P, B)
    log_soft = jax.nn.log_softmax(proj, axis=0)
    return h[None], log_soft


if __name__ == "__main__":
    # Small shapes consistent with the module's forward (seq-first RNN input).
    S, B, I, H, P = 8, 4, 16, 32, 10

    key = jax.random.PRNGKey(0)
    ks = jax.random.split(key, 7)
    bound_rnn = 1.0 / np.sqrt(H)
    x = jax.random.normal(ks[0], (S, B, I), jnp.float32)
    w_ih = jax.random.uniform(ks[1], (H, I), jnp.float32, -bound_rnn, bound_rnn)
    w_hh = jax.random.uniform(ks[2], (H, H), jnp.float32, -bound_rnn, bound_rnn)
    b_ih = jax.random.uniform(ks[3], (H,), jnp.float32, -bound_rnn, bound_rnn)
    b_hh = jax.random.uniform(ks[4], (H,), jnp.float32, -bound_rnn, bound_rnn)
    w_out = jax.random.uniform(ks[5], (P, H), jnp.float32, -bound_rnn, bound_rnn)
    b_out = jax.random.uniform(ks[6], (P,), jnp.float32, -bound_rnn, bound_rnn)

    h_n, log_soft = custom_rnn_forward(x, w_ih, w_hh, b_ih, b_hh, w_out, b_out)
    jax.block_until_ready((h_n, log_soft))

    h_n_ref, log_soft_ref = reference_forward(x, w_ih, w_hh, b_ih, b_hh,
                                              w_out, b_out)
    np.testing.assert_allclose(np.asarray(h_n), np.asarray(h_n_ref),
                               rtol=1e-5, atol=1e-5)
    np.testing.assert_allclose(np.asarray(log_soft), np.asarray(log_soft_ref),
                               rtol=1e-5, atol=1e-5)

    print("KERNEL_OK")
</pallas_src>

<mosaic_0001>
module attributes {stable_mosaic.version = 11 : i64} {
  func.func @rnn_kernel(%arg0: memref<64x16xf32, #tpu.memory_space<vmem>>, %arg1: memref<16x32xf32, #tpu.memory_space<vmem>>, %arg2: memref<32x32xf32, #tpu.memory_space<vmem>>, %arg3: memref<1x32xf32, #tpu.memory_space<vmem>>, %arg4: memref<32x10xf32, #tpu.memory_space<vmem>>, %arg5: memref<1x10xf32, #tpu.memory_space<vmem>>, %arg6: memref<1x8x32xf32, #tpu.memory_space<vmem>>, %arg7: memref<8x10xf32, #tpu.memory_space<vmem>>) attributes {dimension_semantics = [], scalar_prefetch = 0 : i64, scratch_operands = 0 : i64, tpu.core_type = #tpu.core_type<tc>} {
    %c0 = arith.constant 0 : index
    %c0_0 = arith.constant 0 : index
    %0 = vector.load %arg0[%c0, %c0_0] : memref<64x16xf32, #tpu.memory_space<vmem>>, vector<64x16xf32>
    %c0_1 = arith.constant 0 : index
    %c0_2 = arith.constant 0 : index
    %1 = vector.load %arg1[%c0_1, %c0_2] : memref<16x32xf32, #tpu.memory_space<vmem>>, vector<16x32xf32>
    %cst = arith.constant dense<0.000000e+00> : vector<64x32xf32>
    %2 = tpu.matmul %0, %1, %cst {dimension_numbers = #tpu.dot_dimension_numbers<[1], [0], [0], [1], [0, 0, 1, 1], [], []>} : vector<64x16xf32>, vector<16x32xf32>, vector<64x32xf32> -> vector<64x32xf32>
    %c0_3 = arith.constant 0 : index
    %c0_4 = arith.constant 0 : index
    %3 = vector.load %arg3[%c0_3, %c0_4] : memref<1x32xf32, #tpu.memory_space<vmem>>, vector<1x32xf32>
    %4 = vector.broadcast %3 : vector<1x32xf32> to vector<64x32xf32>
    %5 = arith.addf %2, %4 : vector<64x32xf32>
    %cst_5 = arith.constant 0.000000e+00 : f32
    %6 = vector.broadcast %cst_5 : f32 to vector<8x32xf32>
    %7 = vector.extract_strided_slice %5 {offsets = [0, 0], sizes = [8, 32], strides = [1, 1]} : vector<64x32xf32> to vector<8x32xf32>
    %c0_6 = arith.constant 0 : index
    %c0_7 = arith.constant 0 : index
    %8 = vector.load %arg2[%c0_6, %c0_7] : memref<32x32xf32, #tpu.memory_space<vmem>>, vector<32x32xf32>
    %cst_8 = arith.constant dense<0.000000e+00> : vector<8x32xf32>
    %9 = tpu.matmul %6, %8, %cst_8 {dimension_numbers = #tpu.dot_dimension_numbers<[1], [0], [0], [1], [0, 0, 1, 1], [], []>} : vector<8x32xf32>, vector<32x32xf32>, vector<8x32xf32> -> vector<8x32xf32>
    %10 = arith.addf %7, %9 : vector<8x32xf32>
    %11 = math.tanh %10 : vector<8x32xf32>
    %12 = vector.extract_strided_slice %5 {offsets = [8, 0], sizes = [8, 32], strides = [1, 1]} : vector<64x32xf32> to vector<8x32xf32>
    %c0_9 = arith.constant 0 : index
    %c0_10 = arith.constant 0 : index
    %13 = vector.load %arg2[%c0_9, %c0_10] : memref<32x32xf32, #tpu.memory_space<vmem>>, vector<32x32xf32>
    %cst_11 = arith.constant dense<0.000000e+00> : vector<8x32xf32>
    %14 = tpu.matmul %11, %13, %cst_11 {dimension_numbers = #tpu.dot_dimension_numbers<[1], [0], [0], [1], [0, 0, 1, 1], [], []>} : vector<8x32xf32>, vector<32x32xf32>, vector<8x32xf32> -> vector<8x32xf32>
    %15 = arith.addf %12, %14 : vector<8x32xf32>
    %16 = math.tanh %15 : vector<8x32xf32>
    %17 = vector.extract_strided_slice %5 {offsets = [16, 0], sizes = [8, 32], strides = [1, 1]} : vector<64x32xf32> to vector<8x32xf32>
    %c0_12 = arith.constant 0 : index
    %c0_13 = arith.constant 0 : index
    %18 = vector.load %arg2[%c0_12, %c0_13] : memref<32x32xf32, #tpu.memory_space<vmem>>, vector<32x32xf32>
    %cst_14 = arith.constant dense<0.000000e+00> : vector<8x32xf32>
    %19 = tpu.matmul %16, %18, %cst_14 {dimension_numbers = #tpu.dot_dimension_numbers<[1], [0], [0], [1], [0, 0, 1, 1], [], []>} : vector<8x32xf32>, vector<32x32xf32>, vector<8x32xf32> -> vector<8x32xf32>
    %20 = arith.addf %17, %19 : vector<8x32xf32>
    %21 = math.tanh %20 : vector<8x32xf32>
    %22 = vector.extract_strided_slice %5 {offsets = [24, 0], sizes = [8, 32], strides = [1, 1]} : vector<64x32xf32> to vector<8x32xf32>
    %c0_15 = arith.constant 0 : index
    %c0_16 = arith.constant 0 : index
    %23 = vector.load %arg2[%c0_15, %c0_16] : memref<32x32xf32, #tpu.memory_space<vmem>>, vector<32x32xf32>
    %cst_17 = arith.constant dense<0.000000e+00> : vector<8x32xf32>
    %24 = tpu.matmul %21, %23, %cst_17 {dimension_numbers = #tpu.dot_dimension_numbers<[1], [0], [0], [1], [0, 0, 1, 1], [], []>} : vector<8x32xf32>, vector<32x32xf32>, vector<8x32xf32> -> vector<8x32xf32>
    %25 = arith.addf %22, %24 : vector<8x32xf32>
    %26 = math.tanh %25 : vector<8x32xf32>
    %27 = vector.extract_strided_slice %5 {offsets = [32, 0], sizes = [8, 32], strides = [1, 1]} : vector<64x32xf32> to vector<8x32xf32>
    %c0_18 = arith.constant 0 : index
    %c0_19 = arith.constant 0 : index
    %28 = vector.load %arg2[%c0_18, %c0_19] : memref<32x32xf32, #tpu.memory_space<vmem>>, vector<32x32xf32>
    %cst_20 = arith.constant dense<0.000000e+00> : vector<8x32xf32>
    %29 = tpu.matmul %26, %28, %cst_20 {dimension_numbers = #tpu.dot_dimension_numbers<[1], [0], [0], [1], [0, 0, 1, 1], [], []>} : vector<8x32xf32>, vector<32x32xf32>, vector<8x32xf32> -> vector<8x32xf32>
    %30 = arith.addf %27, %29 : vector<8x32xf32>
    %31 = math.tanh %30 : vector<8x32xf32>
    %32 = vector.extract_strided_slice %5 {offsets = [40, 0], sizes = [8, 32], strides = [1, 1]} : vector<64x32xf32> to vector<8x32xf32>
    %c0_21 = arith.constant 0 : index
    %c0_22 = arith.constant 0 : index
    %33 = vector.load %arg2[%c0_21, %c0_22] : memref<32x32xf32, #tpu.memory_space<vmem>>, vector<32x32xf32>
    %cst_23 = arith.constant dense<0.000000e+00> : vector<8x32xf32>
    %34 = tpu.matmul %31, %33, %cst_23 {dimension_numbers = #tpu.dot_dimension_numbers<[1], [0], [0], [1], [0, 0, 1, 1], [], []>} : vector<8x32xf32>, vector<32x32xf32>, vector<8x32xf32> -> vector<8x32xf32>
    %35 = arith.addf %32, %34 : vector<8x32xf32>
    %36 = math.tanh %35 : vector<8x32xf32>
    %37 = vector.extract_strided_slice %5 {offsets = [48, 0], sizes = [8, 32], strides = [1, 1]} : vector<64x32xf32> to vector<8x32xf32>
    %c0_24 = arith.constant 0 : index
    %c0_25 = arith.constant 0 : index
    %38 = vector.load %arg2[%c0_24, %c0_25] : memref<32x32xf32, #tpu.memory_space<vmem>>, vector<32x32xf32>
    %cst_26 = arith.constant dense<0.000000e+00> : vector<8x32xf32>
    %39 = tpu.matmul %36, %38, %cst_26 {dimension_numbers = #tpu.dot_dimension_numbers<[1], [0], [0], [1], [0, 0, 1, 1], [], []>} : vector<8x32xf32>, vector<32x32xf32>, vector<8x32xf32> -> vector<8x32xf32>
    %40 = arith.addf %37, %39 : vector<8x32xf32>
    %41 = math.tanh %40 : vector<8x32xf32>
    %42 = vector.extract_strided_slice %5 {offsets = [56, 0], sizes = [8, 32], strides = [1, 1]} : vector<64x32xf32> to vector<8x32xf32>
    %c0_27 = arith.constant 0 : index
    %c0_28 = arith.constant 0 : index
    %43 = vector.load %arg2[%c0_27, %c0_28] : memref<32x32xf32, #tpu.memory_space<vmem>>, vector<32x32xf32>
    %cst_29 = arith.constant dense<0.000000e+00> : vector<8x32xf32>
    %44 = tpu.matmul %41, %43, %cst_29 {dimension_numbers = #tpu.dot_dimension_numbers<[1], [0], [0], [1], [0, 0, 1, 1], [], []>} : vector<8x32xf32>, vector<32x32xf32>, vector<8x32xf32> -> vector<8x32xf32>
    %45 = arith.addf %42, %44 : vector<8x32xf32>
    %46 = math.tanh %45 : vector<8x32xf32>
    %c0_30 = arith.constant 0 : index
    %c0_31 = arith.constant 0 : index
    %c0_32 = arith.constant 0 : index
    %47 = vector.load %arg6[%c0_30, %c0_31, %c0_32] : memref<1x8x32xf32, #tpu.memory_space<vmem>>, vector<1x8x32xf32>
    %48 = vector.shape_cast %47 : vector<1x8x32xf32> to vector<8x32xf32>
    %49 = vector.shape_cast %46 : vector<8x32xf32> to vector<1x8x32xf32>
    tpu.vector_store %arg6[%c0_30, %c0_31, %c0_32], %49 {strides = array<i32>} : memref<1x8x32xf32, #tpu.memory_space<vmem>>, vector<1x8x32xf32>,
    %c0_33 = arith.constant 0 : index
    %c0_34 = arith.constant 0 : index
    %50 = vector.load %arg4[%c0_33, %c0_34] : memref<32x10xf32, #tpu.memory_space<vmem>>, vector<32x10xf32>
    %cst_35 = arith.constant dense<0.000000e+00> : vector<8x10xf32>
    %51 = tpu.matmul %46, %50, %cst_35 {dimension_numbers = #tpu.dot_dimension_numbers<[1], [0], [0], [1], [0, 0, 1, 1], [], []>} : vector<8x32xf32>, vector<32x10xf32>, vector<8x10xf32> -> vector<8x10xf32>
    %c0_36 = arith.constant 0 : index
    %c0_37 = arith.constant 0 : index
    %52 = vector.load %arg5[%c0_36, %c0_37] : memref<1x10xf32, #tpu.memory_space<vmem>>, vector<1x10xf32>
    %53 = vector.broadcast %52 : vector<1x10xf32> to vector<8x10xf32>
    %54 = arith.addf %51, %53 : vector<8x10xf32>
    %cst_38 = arith.constant dense<0xFF800000> : vector<8xf32>
    %55 = vector.multi_reduction <maximumf>, %54, %cst_38 [1] : vector<8x10xf32> to vector<8xf32>
    %56 = vector.shape_cast %55 : vector<8xf32> to vector<8x1xf32>
    %57 = vector.broadcast %56 : vector<8x1xf32> to vector<8x10xf32>
    %58 = arith.subf %54, %57 : vector<8x10xf32>
    %59 = math.exp %58 : vector<8x10xf32>
    %cst_39 = arith.constant dense<0.000000e+00> : vector<8xf32>
    %60 = vector.multi_reduction <add>, %59, %cst_39 [1] : vector<8x10xf32> to vector<8xf32>
    %61 = vector.shape_cast %60 : vector<8xf32> to vector<8x1xf32>
    %62 = math.log %61 : vector<8x1xf32>
    %63 = vector.broadcast %62 : vector<8x1xf32> to vector<8x10xf32>
    %64 = arith.subf %58, %63 : vector<8x10xf32>
    %c0_40 = arith.constant 0 : index
    %c0_41 = arith.constant 0 : index
    %65 = vector.load %arg7[%c0_40, %c0_41] : memref<8x10xf32, #tpu.memory_space<vmem>>, vector<8x10xf32>
    tpu.vector_store %arg7[%c0_40, %c0_41], %64 {strides = array<i32>} : memref<8x10xf32, #tpu.memory_space<vmem>>, vector<8x10xf32>,
    return
  }
}

</mosaic_0001>

<bundles_post_ra>
// kernel: tpu_custom_call.1
= control target key start
LH: loop header
LB: loop body
LE: loop exit
PB: predicated region body
PF: predicated region fallthrough
CT: control target
= control target key end

     0   :  { %13 = vsyncpa [#allocation3], 0  ;;  %vm41_vm0 = vcmask 130048   ;;  %s626_s0 = inlined_call_operand.vmem [shape: f32[64,16], index: 0, kind: input, shape index: {}]   ;;  %s627_s1 = inlined_call_operand.vmem [shape: f32[16,32], index: 1, kind: input, shape index: {}]   ;;  %s628_s2 = inlined_call_operand.vmem [shape: f32[32,32], index: 2, kind: input, shape index: {}]   ;;  %s629_s3 = inlined_call_operand.vmem [shape: f32[1,32], index: 3, kind: input, shape index: {}]   ;;  %s630_s4 = inlined_call_operand.vmem [shape: f32[32,10], index: 4, kind: input, shape index: {}]   ;;  %s631_s5 = inlined_call_operand.vmem [shape: f32[1,10], index: 5, kind: input, shape index: {}]   ;;  %s632_s6 = inlined_call_operand.hbm [shape: f32[1,8,32], index: 6, kind: output, shape index: {0}]   ;;  %s633_s7 = inlined_call_operand.hbm [shape: f32[8,10], index: 7, kind: output, shape index: {1}]  }
   0x1   :  { %v36_v0 = vld [vmem:[%s627_s1 + $0x8] sm:$0xff]  ;;  %v35_v1 = vld [vmem:[%s627_s1] sm:$0xff]  ;;  %v110_v3 = vld [vmem:[%s628_s2 + $0x18] sm:$0xff] }
   0x2   :  { %406 = vmatpush.msra.mxu1 %v36_v0  ;;  %v32_v2 = vld [vmem:[%s626_s0 + $0x28] sm:$0xff]  ;;  %80 = vmatpush.msra.mxu0 %v36_v0  ;;  %v27_v4 = vld [vmem:[%s626_s0] sm:$0xff] }
   0x3   :  { %407 = vmatpush.msra.mxu2 %v36_v0  ;;  %177 = vmatpush.msra.mxu3 %v110_v3 }
   0x4   :  { %408 = vmatpush.msra.mxu1 %v35_v1  ;;  %81 = vmatpush.msra.mxu0 %v35_v1 }
   0x5   :  { %14 = vsyncpa [#allocation5], 0  ;;  %395 = vmatmul.msk.f32.vlgmr.msra.gmra.mxu1 %vm41_vm0, %v32_v2  ;;  %v109_v5 = vld [vmem:[%s628_s2 + $0x10] sm:$0xff]  ;;  %390 = vmatmul.msk.f32.vlgmr.msra.gmra.mxu0 %vm41_vm0, %v27_v4  ;;  %v108_v6 = vld [vmem:[%s628_s2 + $0x8] sm:$0xff]  ;;  %v487_v8 = vmov 0.0   ;;  %vm111_vm1 = vcmask 261120  }
   0x6   :  { %127 = vmatpush.msrb.mxu1 %v110_v3  ;;  %409 = vmatpush.msra.mxu2 %v35_v1  ;;  %v107_v7 = vld [vmem:[%s628_s2] sm:$0xff]  ;;  %v33_v9 = vld [vmem:[%s626_s0 + $0x30] sm:$0xff]  ;;  %v34_v10 = vld [vmem:[%s626_s0 + $0x38] sm:$0xff]  ;;  %vm344_vm2 = vcmask 80896   ;;  %s365_s2 = sshll.u32 %s632_s6, 4  ;;  %s376_s19 = sshll.u32 %s633_s7, 4  ;;  %s366_s2 = int_to_ptr.hbm [resolvable:$true] %s365_s2  ;;  %s377_s19 = int_to_ptr.hbm [resolvable:$true] %s376_s19 }
   0x7   :  { %178 = vmatpush.msra.mxu3 %v109_v5  ;;  %396 = vmatmul.msk.f32.vlgmr.msra.gmra.mxu2 %vm41_vm0, %v33_v9  ;;  %v28_v11 = vld [vmem:[%s626_s0 + $0x8] sm:$0xff]  ;;  %v571_v14 = vld [vmem:[%s629_s3] ss:$0 sm:$0xff]  ;;  %v29_v19 = vld [vmem:[%s626_s0 + $0x10] sm:$0xff] }
   0x8   :  { %152 = vmatpush.msrb.mxu2 %v110_v3  ;;  %128 = vmatpush.msrb.mxu1 %v109_v5  ;;  %v30_v27 = vld [vmem:[%s626_s0 + $0x18] sm:$0xff]  ;;  %v31_v33 = vld [vmem:[%s626_s0 + $0x20] sm:$0xff]  ;;  %v315_v53 = vld [vmem:[%s630_s4 + $0x10] sm:$0xff] }
   0x9   :  { %179 = vmatpush.msra.mxu3 %v108_v6  ;;  %v316_v52 = vld [vmem:[%s630_s4 + $0x18] sm:$0xff]  ;;  %v314_v54 = vld [vmem:[%s630_s4 + $0x8] sm:$0xff]  ;;  %v313_v55 = vld [vmem:[%s630_s4] sm:$0xff]  ;;  %s488_s4 = smov [#allocation2]  }
   0xa   :  { %153 = vmatpush.msrb.mxu2 %v109_v5  ;;  %129 = vmatpush.msrb.mxu1 %v108_v6  ;;  %v414_v60 = vld [vmem:[%s631_s5] ss:$0 sm:$0xff]  ;;  %s363_s13 = sshll.u32 %s488_s4, 4  ;;  %s489_s5 = smov [#allocation4]   ;;  %s364_s13 = int_to_ptr.vmem [resolvable:$true] %s363_s13 }
   0xb   :  { %180 = vmatpush.msra.mxu3 %v107_v7  ;;  %s374_s16 = sshll.u32 %s489_s5, 4  ;;  %s375_s16 = int_to_ptr.vmem [resolvable:$true] %s374_s16 }
   0xc   :  { %154 = vmatpush.msrb.mxu2 %v108_v6  ;;  %130 = vmatpush.msrb.mxu1 %v107_v7 }
   0xd   :  { %252 = vmatpush.msrb.mxu3 %v110_v3  ;;  %131 = vmatmul.f32.vlgmr.msrb.gmra.mxu1 %v487_v8 }
   0xe   :  { %155 = vmatpush.msrb.mxu2 %v107_v7  ;;  %202 = vmatpush.msra.mxu1 %v110_v3 }
   0xf   :  { %253 = vmatpush.msrb.mxu3 %v109_v5  ;;  %397 = vmatmul.msk.f32.gmra.mxu2 %vm41_vm0, %v34_v10 }
  0x10   :  { %203 = vmatpush.msra.mxu1 %v109_v5  ;;  %227 = vmatpush.msra.mxu2 %v110_v3 }
  0x11   :  { %254 = vmatpush.msrb.mxu3 %v108_v6  ;;  %391 = vmatmul.msk.f32.gmra.mxu0 %vm41_vm0, %v28_v11 }
  0x12   :  { %204 = vmatpush.msra.mxu1 %v108_v6  ;;  %228 = vmatpush.msra.mxu2 %v109_v5 }
  0x13   :  { %255 = vmatpush.msrb.mxu3 %v107_v7 }
  0x14   :  { %205 = vmatpush.msra.mxu1 %v107_v7  ;;  %229 = vmatpush.msra.mxu2 %v108_v6 }
  0x16   :  { %277 = vmatpush.msrb.mxu1 %v110_v3  ;;  %230 = vmatpush.msra.mxu2 %v107_v7 }
  0x18   :  { %278 = vmatpush.msrb.mxu1 %v109_v5 }
  0x19   :  { %392 = vmatmul.msk.f32.gmra.mxu0 %vm41_vm0, %v29_v19 }
  0x1a   :  { %279 = vmatpush.msrb.mxu1 %v108_v6 }
  0x1c   :  { %280 = vmatpush.msrb.mxu1 %v107_v7 }
  0x21   :  { %393 = vmatmul.msk.f32.gmra.mxu0 %vm41_vm0, %v30_v27 }
  0x29   :  { %394 = vmatmul.msk.f32.gmra.mxu0 %vm41_vm0, %v31_v33 }
  0x82   :  { %v98_v12 = vpop.f32.mrf.mxu1  ;;  %v83_v13 = vpop.f32.mrf.mxu0 }
  0x83   :  { %v84_v15 = vadd.f32 %v571_v14, %v83_v13  ;;  %v99_v44 = vadd.f32 %v571_v14, %v98_v12 }
  0x8a   :  { %v132_v16 = vpop.f32.mrf.mxu1  ;;  %v101_v20 = vpop.f32.mrf.mxu2 }
  0x8b   :  { %v135_v17 = vadd.f32 %v132_v16, %v84_v15  ;;  %v102_v48 = vadd.f32 %v571_v14, %v101_v20 }
  0x8d   :  { %415 = vtanh.f32 %v135_v17 }
  0x8e   :  { %v86_v22 = vpop.f32.mrf.mxu0 }
  0x8f   :  { %v87_v23 = vadd.f32 %v571_v14, %v86_v22 }
  0x92   :  { %v104_v21 = vpop.f32.mrf.mxu2 }
  0x93   :  { %v416_v18 = vpop.eup %415  ;;  %v105_v56 = vadd.f32 %v571_v14, %v104_v21 }
  0x94   :  { %398 = vmatmul.msk.f32.vlgmr.msrb.gmra.mxu2 %vm111_vm1, %v416_v18 }
  0x95   :  { %302 = vmatpush.msrb.mxu2 %v110_v3 }
  0x96   :  { %v89_v28 = vpop.f32.mrf.mxu0 }
  0x97   :  { %303 = vmatpush.msrb.mxu2 %v109_v5  ;;  %v90_v29 = vadd.f32 %v571_v14, %v89_v28 }
  0x99   :  { %304 = vmatpush.msrb.mxu2 %v108_v6 }
  0x9b   :  { %305 = vmatpush.msrb.mxu2 %v107_v7 }
  0x9e   :  { %v92_v34 = vpop.f32.mrf.mxu0 }
  0x9f   :  { %v93_v35 = vadd.f32 %v571_v14, %v92_v34 }
  0xa6   :  { %v95_v39 = vpop.f32.mrf.mxu0 }
  0xa7   :  { %v96_v40 = vadd.f32 %v571_v14, %v95_v39 }
 0x117   :  { %v157_v24 = vpop.f32.mrf.mxu2 }
 0x118   :  { %v160_v25 = vadd.f32 %v157_v24, %v87_v23 }
 0x11a   :  { %417 = vtanh.f32 %v160_v25 }
 0x120   :  { %v418_v26 = vpop.eup %417 }
 0x121   :  { %399 = vmatmul.msk.f32.vlgmr.msra.gmra.mxu3 %vm111_vm1, %v418_v26 }
 0x122   :  { %336 = vmatpush.msra.mxu3 %v316_v52 }
 0x124   :  { %337 = vmatpush.msra.mxu3 %v315_v53 }
 0x126   :  { %338 = vmatpush.msra.mxu3 %v314_v54 }
 0x128   :  { %339 = vmatpush.msra.mxu3 %v313_v55 }
 0x1a4   :  { %v182_v30 = vpop.f32.mrf.mxu3 }
 0x1a5   :  { %v185_v31 = vadd.f32 %v182_v30, %v90_v29 }
 0x1a7   :  { %419 = vtanh.f32 %v185_v31 }
 0x1ad   :  { %v420_v32 = vpop.eup %419 }
 0x1ae   :  { %400 = vmatmul.msk.f32.vlgmr.msra.gmra.mxu1 %vm111_vm1, %v420_v32 }
 0x22b   :  { %v207_v36 = vpop.f32.mrf.mxu1 }
 0x22c   :  { %v210_v37 = vadd.f32 %v207_v36, %v93_v35 }
 0x22e   :  { %421 = vtanh.f32 %v210_v37 }
 0x234   :  { %v422_v38 = vpop.eup %421 }
 0x235   :  { %401 = vmatmul.msk.f32.vlgmr.msra.gmra.mxu2 %vm111_vm1, %v422_v38 }
 0x2b8   :  { %v232_v41 = vpop.f32.mrf.mxu2 }
 0x2b9   :  { %v235_v42 = vadd.f32 %v232_v41, %v96_v40 }
 0x2bb   :  { %423 = vtanh.f32 %v235_v42 }
 0x2c1   :  { %v424_v43 = vpop.eup %423 }
 0x2c2   :  { %402 = vmatmul.msk.f32.vlgmr.msrb.gmra.mxu3 %vm111_vm1, %v424_v43 }
 0x345   :  { %v257_v45 = vpop.f32.mrf.mxu3 }
 0x346   :  { %v260_v46 = vadd.f32 %v257_v45, %v99_v44 }
 0x348   :  { %425 = vtanh.f32 %v260_v46 }
 0x34e   :  { %v426_v47 = vpop.eup %425 }
 0x34f   :  { %403 = vmatmul.msk.f32.vlgmr.msrb.gmra.mxu1 %vm111_vm1, %v426_v47 }
 0x3cc   :  { %v282_v49 = vpop.f32.mrf.mxu1 }
 0x3cd   :  { %v285_v50 = vadd.f32 %v282_v49, %v102_v48 }
 0x3cf   :  { %427 = vtanh.f32 %v285_v50 }
 0x3d5   :  { %v428_v51 = vpop.eup %427 }
 0x3d6   :  { %404 = vmatmul.msk.f32.vlgmr.msrb.gmra.mxu2 %vm111_vm1, %v428_v51 }
 0x459   :  { %v307_v57 = vpop.f32.mrf.mxu2 }
 0x45a   :  { %v310_v58 = vadd.f32 %v307_v57, %v105_v56 }
 0x45c   :  { %429 = vtanh.f32 %v310_v58 }
 0x462   :  { %v430_v59 = vpop.eup %429 }
 0x463   :  { %312 = vst.msk [vmem:[#allocation2] sm:$0xff] %vm111_vm1, %v430_v59  ;;  %405 = vmatmul.msk.f32.vlgmr.msra.gmra.mxu3 %vm111_vm1, %v430_v59 }
 0x464   :  { %368 = dma.vmem_to_hbm [thread:$0]  %s364_s13, 128, %s366_s2, [#allocation3]  }
 0x4e6   :  { %v341_v61 = vpop.f32.mrf.mxu3 }
 0x4e7   :  { %v342_v62 = vadd.f32 %v414_v60, %v341_v61 }
 0x4e9   :  { %v345_v63 = vsel %vm344_vm2, %v342_v62, -inf }
 0x4ea   :  { %346 = vmax.xlane.f32.xlu0 %v345_v63 }
 0x55d   :  { %v347_v0 = vpop.xlane.xlu0 %346 }
 0x55e   :  { %v348_v1 = vsub.f32 %v342_v62, %v347_v0 }
 0x560   :  { %v349_v2 = vmul.f32 1.442695, %v348_v1 }
 0x562   :  { %431 = vpow2.f32 %v349_v2 }
 0x568   :  { %v432_v3 = vpop.eup %431 }
 0x569   :  { %v351_v4 = vsel %vm344_vm2, %v432_v3, 0.0 }
 0x56a   :  { %352 = vadd.xlane.f32.xlu0 %v351_v4 }
 0x5dd   :  { %v353_v5 = vpop.xlane.xlu0 %352 }
 0x5de   :  { %433 = vlog2.f32 %v353_v5 }
 0x5e4   :  { %v434_v6 = vpop.eup %433 }
 0x5e5   :  { %v355_v7 = vmul.f32 0.6931472, %v434_v6 }
 0x5e7   :  { %v356_v8 = vsub.f32 %v348_v1, %v355_v7 }
 0x5e9   :  { %357 = vst.msk [vmem:[#allocation4] sm:$0xff] %vm344_vm2, %v356_v8 }
 0x5ea   :  { %379 = dma.vmem_to_hbm [thread:$0]  %s375_s16, 128, %s377_s19, [#allocation5]  }
 0x5eb   :  { %483 = dma.done.wait [#allocation3], 128  }
 0x5ec   :  { %484 = vsyncadd [#allocation3], 4294967168 }
 0x5ed   :  { %485 = dma.done.wait [#allocation5], 128  }
 0x5ee   :  { %486 = vsyncadd [#allocation5], 4294967168 }
 0x5ef   :  { %388 = vsyncpa [#allocation3], 1 }
 0x5f0   :  { %389 = vsyncpa [#allocation5], 1 }

</bundles_post_ra>
